<compile_context>
chip_gen: v7x
topology: tpu7x:2x2x1
jax: 0.10.0
libtpu: 0.0.40
codegen_flags: <defaults>
</compile_context>

<pallas_src>
import jax
import jax.numpy as jnp
from jax.experimental import pallas as pl
from jax.experimental.pallas import tpu as pltpu


def _nerflet_loss_kernel(head_ref, acc_ref):
    # acc_ref: (8, tile_n) lane-dense accumulator, resident across the inner
    # (reduction) grid axis.
    @pl.when(pl.program_id(1) == 0)
    def _init():
        acc_ref[...] = jnp.zeros_like(acc_ref)

    head = head_ref[...]                     # (8, tile_n) f32
    rgb = head[0:3, :]                       # (3, tile_n)
    tgt = head[3:6, :]                       # (3, tile_n)
    beta = head[6:7, :]                      # (1, tile_n)
    mask = head[7:8, :]                      # (1, tile_n)

    inv = (0.5 * mask) / (beta * beta)       # per-ray factor, (1, tile_n)
    weighted = (rgb - tgt) ** 2 * inv        # (3, tile_n)
    logb_mask = jnp.log(beta) * mask         # (1, tile_n)

    # One full-tile (8, tile_n) update -> single unmasked vector add/store.
    update = jnp.concatenate(
        [weighted,                           # rows 0-2: weighted sq. error
         mask,                               # row 3   : mask
         logb_mask,                          # row 4   : log(beta)*mask
         jnp.zeros_like(weighted)],          # rows 5-7: unused
        axis=0)
    acc_ref[...] += update


def nerflet_w_loss(combined_rgb_map, beta, transient_occ, targets, ray_mask,
                   coef=1.0, lambda_u=0.01, max_tile_n=32768):
    """JAX/Pallas equivalent of NerfletWLoss.forward."""
    N = combined_rgb_map.shape[0]
    f32 = jnp.float32
    lane = 128

    # ---- lane-tile selection -------------------------------------------------
    max_tile_n = max(lane, (int(max_tile_n) // lane) * lane)
    n_blocks = -(-N // lane)                  # ray count in 128-lane blocks
    mt_blocks = max_tile_n // lane
    if n_blocks >= 2:
        # At least 2 tiles, and an even number of them, so the outer
        # "parallel" axis splits evenly across the 2 v7x TensorCores.
        num_tiles = max(2, -(-n_blocks // mt_blocks))
        if num_tiles % 2:
            num_tiles += 1
        tile_blocks = -(-n_blocks // num_tiles)   # minimize padding
    else:
        num_tiles, tile_blocks = 1, 1
    tile_n = tile_blocks * lane
    n_pad = num_tiles * tile_n
    pad = n_pad - N
    P = 2 if (num_tiles >= 2 and num_tiles % 2 == 0) else 1
    T_inner = num_tiles // P

    # ---- head slab: one concatenate + one transpose ---------------------------
    head_nc = jnp.concatenate(
        [combined_rgb_map.astype(f32),        # cols 0-2
         targets.astype(f32),                 # cols 3-5
         beta.astype(f32)[:, None],           # col 6
         ray_mask.astype(f32)[:, None]],      # col 7
        axis=1)                               # (N, 8)
    if pad:
        # Padding rows: beta=1 (finite 1/beta^2, log=0), mask=0, rgb=tgt=0
        # -> exactly zero contribution to every accumulator row.
        pad_rows = jnp.zeros((pad, 8), f32).at[:, 6].set(1.0)
        head_nc = jnp.concatenate([head_nc, pad_rows], axis=0)
    head = head_nc.T                          # (8, n_pad), rays on lanes

    # ---- VMEM budget: 2x head block (double-buffered) + 2x acc block + slack --
    head_block_bytes = 8 * tile_n * 4
    acc_block_bytes = 8 * tile_n * 4
    vmem_limit = 2 * (head_block_bytes + acc_block_bytes) + (8 << 20)
    vmem_limit = int(min(max(vmem_limit, 16 << 20), 64 << 20))

    acc = pl.pallas_call(
        _nerflet_loss_kernel,
        out_shape=jax.ShapeDtypeStruct((P, 8, tile_n), f32),
        grid_spec=pltpu.PrefetchScalarGridSpec(
            num_scalar_prefetch=0,
            grid=(P, T_inner),
            in_specs=[
                pl.BlockSpec((8, tile_n), lambda p, t: (0, p * T_inner + t)),
            ],
            out_specs=pl.BlockSpec((None, 8, tile_n), lambda p, t: (p, 0, 0)),
        ),
        compiler_params=pltpu.CompilerParams(
            dimension_semantics=("parallel", "arbitrary"),
            vmem_limit_bytes=vmem_limit),
    )(head)

    # ---- tiny epilogue in plain JAX -------------------------------------------
    f_num = jnp.sum(acc[:, 0:3, :])
    mask_sum = jnp.sum(acc[:, 3, :])
    b_num = jnp.sum(acc[:, 4, :])

    ray_mask_sum = mask_sum + 1e-20
    # s_l: single XLA reduce on the natural (N, S) layout (see header note).
    s_l = lambda_u * jnp.mean(transient_occ.astype(f32))

    ret = {
        'f_l': f_num / ray_mask_sum,
        'b_l': 3.0 + b_num / ray_mask_sum,
        's_l': s_l,
    }
    return {k: coef * v for k, v in ret.items()}


def _reference(combined_rgb_map, beta, transient_occ, targets, ray_mask,
               coef=1.0, lambda_u=0.01):
    ray_mask_sum = ray_mask.sum() + 1e-20
    f_l = ((combined_rgb_map - targets) ** 2 / (2 * beta[:, None] ** 2)
           * ray_mask[:, None]).sum() / ray_mask_sum
    b_l = 3 + (jnp.log(beta) * ray_mask).sum() / ray_mask_sum
    s_l = lambda_u * transient_occ.mean()
    return {'f_l': coef * f_l, 'b_l': coef * b_l, 's_l': coef * s_l}


def _make_inputs(key, n_rays, n_samples):
    k1, k2, k3, k4, k5 = jax.random.split(key, 5)
    rgb = jax.random.uniform(k1, (n_rays, 3), dtype=jnp.float32)
    targets = jax.random.uniform(k2, (n_rays, 3), dtype=jnp.float32)
    beta = jax.random.uniform(k3, (n_rays,), minval=0.1, maxval=1.0,
                              dtype=jnp.float32)
    occ = jax.random.uniform(k4, (n_rays, n_samples), dtype=jnp.float32)
    mask = (jax.random.uniform(k5, (n_rays,)) > 0.3).astype(jnp.float32)
    return rgb, beta, occ, targets, mask


def _check(out, ref):
    for k in out:
        assert jnp.allclose(out[k], ref[k], rtol=1e-5, atol=1e-5), (
            k, out[k], ref[k])


if __name__ == "__main__":
    key = jax.random.PRNGKey(0)
    kA, kB, kC = jax.random.split(key, 3)

    # Case 1: tiny single-tile, single-step problem.
    args = _make_inputs(kA, 128, 8)
    out = nerflet_w_loss(*args, coef=1.0, lambda_u=0.01)
    out = {k: jax.block_until_ready(v) for k, v in out.items()}
    _check(out, _reference(*args, coef=1.0, lambda_u=0.01))

    # Case 2: non-multiple-of-128 ray count with a forced small tile ->
    # padding, P=2 outer parallel axis and T_inner=2 accumulation steps.
    args = _make_inputs(kB, 450, 6)
    out = nerflet_w_loss(*args, coef=2.0, lambda_u=0.05, max_tile_n=128)
    out = {k: jax.block_until_ready(v) for k, v in out.items()}
    _check(out, _reference(*args, coef=2.0, lambda_u=0.05))

    # Case 3: default (large) tile cap, moderate N -> tile auto-capped so the
    # outer parallel axis still gets 2 even tiles.
    args = _make_inputs(kC, 1000, 4)
    out = nerflet_w_loss(*args, coef=1.0, lambda_u=0.01)
    out = {k: jax.block_until_ready(v) for k, v in out.items()}
    _check(out, _reference(*args, coef=1.0, lambda_u=0.01))

    print("KERNEL_OK")
</pallas_src>

<mosaic_0001>
module attributes {stable_mosaic.version = 11 : i64} {
  func.func @_nerflet_loss_kernel(%arg0: i32, %arg1: i32, %arg2: memref<8x128xf32, #tpu.memory_space<vmem>>, %arg3: memref<1x8x128xf32, #tpu.memory_space<vmem>>) attributes {dimension_semantics = [#tpu.dimension_semantics<parallel>, #tpu.dimension_semantics<arbitrary>], iteration_bounds = array<i64: 1, 1>, scalar_prefetch = 0 : i64, scratch_operands = 0 : i64, tpu.core_type = #tpu.core_type<tc>, window_params = [{transform_indices = @transform_0, window_bounds = array<i64: 8, 128>}, {transform_indices = @transform_1, window_bounds = array<i64: 1, 8, 128>}]} {
    %c0_i32 = arith.constant 0 : i32
    %0 = arith.cmpi eq, %arg1, %c0_i32 : i32
    %1 = arith.extui %0 : i1 to i32
    %c0_i32_0 = arith.constant 0 : i32
    %2 = arith.cmpi ne, %1, %c0_i32_0 : i32
    scf.if %2 {
      %cst_9 = arith.constant 0.000000e+00 : f32
      %26 = vector.broadcast %cst_9 : f32 to vector<8x128xf32>
      %c0_10 = arith.constant 0 : index
      %c0_11 = arith.constant 0 : index
      %c0_12 = arith.constant 0 : index
      %27 = vector.load %arg3[%c0_10, %c0_11, %c0_12] : memref<1x8x128xf32, #tpu.memory_space<vmem>>, vector<1x8x128xf32>
      %28 = vector.shape_cast %27 : vector<1x8x128xf32> to vector<8x128xf32>
      %29 = vector.shape_cast %26 : vector<8x128xf32> to vector<1x8x128xf32>
      tpu.vector_store %arg3[%c0_10, %c0_11, %c0_12], %29 {strides = array<i32>} : memref<1x8x128xf32, #tpu.memory_space<vmem>>, vector<1x8x128xf32>,
    } else {
    }
    %c0 = arith.constant 0 : index
    %c0_1 = arith.constant 0 : index
    %3 = vector.load %arg2[%c0, %c0_1] : memref<8x128xf32, #tpu.memory_space<vmem>>, vector<8x128xf32>
    %4 = vector.extract_strided_slice %3 {offsets = [0, 0], sizes = [3, 128], strides = [1, 1]} : vector<8x128xf32> to vector<3x128xf32>
    %5 = vector.extract_strided_slice %3 {offsets = [3, 0], sizes = [3, 128], strides = [1, 1]} : vector<8x128xf32> to vector<3x128xf32>
    %6 = vector.extract_strided_slice %3 {offsets = [6, 0], sizes = [1, 128], strides = [1, 1]} : vector<8x128xf32> to vector<1x128xf32>
    %7 = vector.extract_strided_slice %3 {offsets = [7, 0], sizes = [1, 128], strides = [1, 1]} : vector<8x128xf32> to vector<1x128xf32>
    %cst = arith.constant 5.000000e-01 : f32
    %8 = vector.broadcast %cst : f32 to vector<1x128xf32>
    %9 = arith.mulf %8, %7 : vector<1x128xf32>
    %10 = arith.mulf %6, %6 : vector<1x128xf32>
    %11 = arith.divf %9, %10 : vector<1x128xf32>
    %12 = arith.subf %4, %5 : vector<3x128xf32>
    %13 = arith.mulf %12, %12 : vector<3x128xf32>
    %14 = vector.broadcast %11 : vector<1x128xf32> to vector<3x128xf32>
    %15 = arith.mulf %13, %14 : vector<3x128xf32>
    %16 = math.log %6 : vector<1x128xf32>
    %17 = arith.mulf %16, %7 : vector<1x128xf32>
    %cst_2 = arith.constant 0.000000e+00 : f32
    %18 = vector.broadcast %cst_2 : f32 to vector<3x128xf32>
    %19 = tpu.concatenate %15, %7, %17, %18 in 0 : vector<3x128xf32>, vector<1x128xf32>, vector<1x128xf32>, vector<3x128xf32> -> vector<8x128xf32>
    %c0_3 = arith.constant 0 : index
    %c0_4 = arith.constant 0 : index
    %c0_5 = arith.constant 0 : index
    %20 = vector.load %arg3[%c0_3, %c0_4, %c0_5] : memref<1x8x128xf32, #tpu.memory_space<vmem>>, vector<1x8x128xf32>
    %21 = vector.shape_cast %20 : vector<1x8x128xf32> to vector<8x128xf32>
    %22 = arith.addf %21, %19 : vector<8x128xf32>
    %c0_6 = arith.constant 0 : index
    %c0_7 = arith.constant 0 : index
    %c0_8 = arith.constant 0 : index
    %23 = vector.load %arg3[%c0_6, %c0_7, %c0_8] : memref<1x8x128xf32, #tpu.memory_space<vmem>>, vector<1x8x128xf32>
    %24 = vector.shape_cast %23 : vector<1x8x128xf32> to vector<8x128xf32>
    %25 = vector.shape_cast %22 : vector<8x128xf32> to vector<1x8x128xf32>
    tpu.vector_store %arg3[%c0_6, %c0_7, %c0_8], %25 {strides = array<i32>} : memref<1x8x128xf32, #tpu.memory_space<vmem>>, vector<1x8x128xf32>,
    return
  }
  func.func @transform_0(%arg0: i32, %arg1: i32) -> (i32, i32) {
    %c1_i32 = arith.constant 1 : i32
    %0 = arith.muli %arg0, %c1_i32 : i32
    %1 = arith.addi %0, %arg1 : i32
    %c0_i32 = arith.constant 0 : i32
    %c0_i32_0 = arith.constant 0 : i32
    return %c0_i32, %1 : i32, i32
  }
  func.func @transform_1(%arg0: i32, %arg1: i32) -> (i32, i32, i32) {
    %c0_i32 = arith.constant 0 : i32
    %c0_i32_0 = arith.constant 0 : i32
    %c0_i32_1 = arith.constant 0 : i32
    return %arg0, %c0_i32, %c0_i32_0 : i32, i32, i32
  }
}

</mosaic_0001>

<bundles_post_ra>
// kernel: tpu_custom_call.1
= control target key start
LH: loop header
LB: loop body
LE: loop exit
PB: predicated region body
PF: predicated region fallthrough
CT: control target
= control target key end

     0   :  { %6 = vsyncpa [#allocation3], 0  ;;  %s173_s0 = inlined_call_operand.hbm [shape: f32[8,128], index: 0, kind: input, shape index: {}]   ;;  %s174_s1 = inlined_call_operand.hbm [shape: f32[1,8,128], index: 1, kind: output, shape index: {}]  }
   0x1   :  { %7 = vsyncpa [#allocation4], 0  ;;  %s137_s6 = smov [#allocation2]   ;;  %s89_s10 = scalar_lea.hbm %s173_s0, 128 }
   0x2   :  { %s17_s7 = sshll.u32 %s137_s6, 4  ;;  %p90_p0 = scmp.ne.s32.totalorder %s173_s0, %s89_s10  ;;  %s18_s7 = int_to_ptr.vmem [resolvable:$true] %s17_s7 }
   0x3   :  { %p93_p1 = scmp.lt.u32.totalorder %s89_s10, %s173_s0 }
   0x5   :  { %p95_p2 = pnand %p93_p1, %p90_p0 }
   0x7   :  { %98 = shalt.err (!%p95_p2)
}
   0x8   :  { %s99_s15 = scalar_lea.vmem %s18_s7, 128  ;;  %p104_p4 = scmp.lt.s32.totalorder %s18_s7, %s18_s7 }
   0x9   :  { %p100_p3 = scmp.ne.s32.totalorder %s18_s7, %s99_s15  ;;  %p105_p5 = scmp.lt.s32.totalorder %s99_s15, %s99_s15 }
   0xb   :  { %p106_p6 = por %p105_p5, %p104_p4 }
   0xd   :  { %p107_p7 = pnand %p106_p6, %p100_p3 }
   0xf   :  { %110 = shalt.err (!%p107_p7)
}
  0x10   :  { %20 = dma.hbm_to_vmem [thread:$0]  %s173_s0, 128, %s18_s7, [#allocation3]  }
  0x11   :  { %133 = dma.done.wait [#allocation3], 128  }
  0x12   :  { %134 = vsyncadd [#allocation3], 4294967168  ;;  %v30_v0 = vld [vmem:[#allocation2] sm:$0xff]  ;;  %v43_v3 = vlaneseq  ;;  %vm58_vm0 = vcmask 1042432   ;;  %vm60_vm1 = vcmask 1043456   ;;  %vm62_vm2 = vcmask 1044480  }
  0x13   :  { %v32_v1 = vmul.f32 %v30_v0, %v30_v0  ;;  %85 = vlog2.f32 %v30_v0  ;;  %v39_v4 = vrot.slane %v30_v0, 3  ;;  %v50_v7 = vrot.slane %v30_v0, 1  ;;  %s138_s0 = smov [#allocation5]  }
  0x14   :  { %v44_v5 = vshrl.u32 %v43_v3, 7  ;;  %v31_v8 = vmul.f32 0.5, %v30_v0  ;;  %v53_v17 = vrot.slane %v30_v0, 4  ;;  %s73_s18 = sshll.u32 %s138_s0, 4  ;;  %s74_s18 = int_to_ptr.vmem [resolvable:$true] %s73_s18 }
  0x15   :  { %v34_v2 = vrot.slane %v32_v1, 7  ;;  %v41_v9 = vsub.f32 %v30_v0, %v39_v4  ;;  %s111_s19 = scalar_lea.vmem %s74_s18, 128  ;;  %p116_p9 = scmp.lt.s32.totalorder %s74_s18, %s74_s18 }
  0x16   :  { %v45_v11 = vsub.s32 7, %v44_v5  ;;  %p112_p8 = scmp.ne.s32.totalorder %s74_s18, %s111_s19  ;;  %p117_p10 = scmp.lt.s32.totalorder %s111_s19, %s111_s19 }
  0x17   :  { %87 = vrcp.f32 %v34_v2  ;;  %v42_v15 = vmul.f32 %v41_v9, %v41_v9 }
  0x18   :  { %p118_p11 = por %p117_p10, %p116_p9 }
  0x1a   :  { %p119_p12 = pnand %p118_p11, %p112_p8 }
  0x1d   :  { %v86_v6 = vpop.eup %85 }
  0x1e   :  { %v49_v10 = vmul.f32 0.6931472, %v86_v6 }
  0x20   :  { %v52_v13 = vmul.f32 %v50_v7, %v49_v10 }
  0x21   :  { %v88_v12 = vpop.eup %87 }
  0x22   :  { %v37_v14 = vmul.f32 %v88_v12, %v31_v8  ;;  %v56_v18 = vrot.slane %v52_v13, 2 }
  0x24   :  { %v46_v16 = vrot.slane %v37_v14, %v45_v11 }
  0x26   :  { %v47_v19 = vmul.f32 %v46_v16, %v42_v15 }
  0x28   :  { %v59_v20 = vsel %vm58_vm0, %v47_v19, %v53_v17 }
  0x29   :  { %v61_v21 = vsel %vm60_vm1, %v59_v20, %v56_v18 }
  0x2a   :  { %v63_v22 = vsel %vm62_vm2, %v61_v21, 0.0 }
  0x2b   :  { %66 = vst [vmem:[#allocation5] sm:$0xff] %v63_v22 }
  0x2c   :  { %122 = shalt.err (!%p119_p12)
}
  0x2d   :  { %s123_s22 = scalar_lea.hbm %s174_s1, 128 }
  0x2e   :  { %p124_p13 = scmp.ne.s32.totalorder %s174_s1, %s123_s22  ;;  %p127_p0 = scmp.lt.u32.totalorder %s123_s22, %s174_s1 }
  0x30   :  { %p129_p1 = pnand %p127_p0, %p124_p13 }
  0x32   :  { %132 = shalt.err (!%p129_p1)
}
  0x33   :  { %76 = dma.vmem_to_hbm [thread:$0]  %s74_s18, 128, %s174_s1, [#allocation4]  }
  0x34   :  { %135 = dma.done.wait [#allocation4], 128  }
  0x35   :  { %136 = vsyncadd [#allocation4], 4294967168 }
  0x36   :  { %80 = vsyncpa [#allocation3], 1 }
  0x37   :  { %81 = vsyncpa [#allocation4], 1 }

</bundles_post_ra>
